<compile_context>
chip_gen: v7x
topology: tpu7x:2x2x1
jax: 0.10.0
libtpu: 0.0.40
codegen_flags: <defaults>
</compile_context>

<pallas_src>
import math

import jax
import jax.numpy as jnp
from jax.experimental import pallas as pl
from jax.experimental.pallas import tpu as pltpu

INPUT_SIZE = 784
HIDDEN_SIZE = 500          # logical hidden size (matches the PyTorch module)
HIDDEN_PAD = 512           # padded to a multiple of 128 for dense MXU tiles
NUM_CLASSES = 10
DEFAULT_TILE_B = 1024      # large tile: amortizes grid-step overhead, fits 32 MiB VMEM
VMEM_LIMIT_BYTES = 32 * 1024 * 1024   # safe on v5e/v6e (128 MiB phys) and v7x (64 MiB phys)


def _round_up(n, m):
    return ((n + m - 1) // m) * m


def _choose_tile_b(B):
    """Pick the batch tile.

    Small B: one grid step, rounded to bf16 sublane (16) / MXU-M (128) sizes.
    Large B: big tiles (default 1024) but always >= 2 grid steps so the
    "parallel" batch axis shards across v7x's two TensorCores.
    """
    if B <= 16:
        return 16
    if B <= 128:
        return _round_up(B, 16)
    if B <= 256:
        return _round_up(B, 128)
    b_aligned = _round_up(B, 256)
    tile = min(DEFAULT_TILE_B, b_aligned)
    if b_aligned // tile < 2:               # force >= 2 grid steps (v7x megacore)
        tile = max(256, _round_up((b_aligned + 1) // 2, 256))
    return tile


def mlp_kernel(x_ref, w1_ref, b1_ref, w2_ref, b2_ref, o_ref):
    # In-kernel f32 -> bf16 cast of x (VPU work hidden under the MXU); avoids a
    # separate wrapper-side cast fusion that would double x HBM traffic.
    x = x_ref[...].astype(jnp.bfloat16)
    # fc1: u1 = x @ W1 + b1   (bf16 MXU inputs, f32 accumulation)
    u1 = jnp.dot(x, w1_ref[...], preferred_element_type=jnp.float32)
    u1 = u1 + b1_ref[...]                     # b1 is [1, HIDDEN_PAD], broadcasts
    # ReLU in f32 on the VPU (portable to v5e, which has no bf16 VPU).
    v1 = jnp.maximum(u1, 0.0)
    # fc2: out = v1 @ W2 + b2  (activations back to bf16 for the MXU)
    out = jnp.dot(v1.astype(jnp.bfloat16), w2_ref[...],
                  preferred_element_type=jnp.float32)
    o_ref[...] = (out + b2_ref[...]).astype(o_ref.dtype)


def prepare_params(w1, b1, w2, b2):
    """One-time weight prep (call once, reuse across forward calls).

    Zero-pads hidden 500 -> 512 and casts W1/W2 to bf16. The padding is exact:
    padded W1 cols / b1 entries give u1 = 0, relu(0) = 0, and the padded
    (zero) W2 rows contribute nothing to the output.
    """
    w1p = jnp.pad(w1, ((0, 0), (0, HIDDEN_PAD - HIDDEN_SIZE))).astype(jnp.bfloat16)
    b1p = jnp.pad(b1, ((0, 0), (0, HIDDEN_PAD - HIDDEN_SIZE))).astype(jnp.float32)
    w2p = jnp.pad(w2, ((0, HIDDEN_PAD - HIDDEN_SIZE), (0, 0))).astype(jnp.bfloat16)
    b2p = b2.astype(jnp.float32)
    return w1p, b1p, w2p, b2p


def mlp_forward(x, params, *, tile_b=None):
    """Forward pass y = relu(x @ W1 + b1) @ W2 + b2.

    x:      [B, 784] f32 (or bf16); cast to bf16 inside the kernel.
    params: output of prepare_params (padded W1/b1/W2 + b2).
    Returns [B, 10] f32.
    """
    w1p, b1p, w2p, b2p = params
    B = x.shape[0]

    if tile_b is None:
        tile_b = _choose_tile_b(B)
    else:
        tile_b = max(16, _round_up(tile_b, 16))
    b_pad = _round_up(B, tile_b)

    xp = x
    if b_pad != B:
        xp = jnp.pad(xp, ((0, b_pad - B), (0, 0)))

    grid = (pl.cdiv(b_pad, tile_b),)

    # TODO(synk): if xprof shows exposed x-tile DMA, add
    # pipeline_mode=pl.Buffered(3) to the x BlockSpec; if vst.msk stores show
    # up, pad NUM_CLASSES -> 128 in out_shape and slice in the wrapper.
    out = pl.pallas_call(
        mlp_kernel,
        out_shape=jax.ShapeDtypeStruct((b_pad, NUM_CLASSES), jnp.float32),
        grid=grid,
        in_specs=[
            # x tile walks the batch; weights/biases are grid-invariant (resident).
            pl.BlockSpec((tile_b, INPUT_SIZE), lambda i: (i, 0)),
            pl.BlockSpec((INPUT_SIZE, HIDDEN_PAD), lambda i: (0, 0)),
            pl.BlockSpec((1, HIDDEN_PAD), lambda i: (0, 0)),
            pl.BlockSpec((HIDDEN_PAD, NUM_CLASSES), lambda i: (0, 0)),
            pl.BlockSpec((1, NUM_CLASSES), lambda i: (0, 0)),
        ],
        out_specs=pl.BlockSpec((tile_b, NUM_CLASSES), lambda i: (i, 0)),
        compiler_params=pltpu.CompilerParams(
            # No cross-tile reduction on the batch axis -> parallel is safe and
            # lets v7x shard the grid across both TensorCores.
            dimension_semantics=("parallel",),
            # Raise v5e's 16 MiB scoped-VMEM default so tile_b=1024 fits
            # everywhere (usage ~14 MB incl. double buffers & intermediates).
            vmem_limit_bytes=VMEM_LIMIT_BYTES,
        ),
    )(xp, w1p, b1p, w2p, b2p)

    return out[:B]


def init_params(key):
    """Deterministic init mimicking torch.nn.Linear default U(-1/sqrt(fan_in), +)."""
    k1, k2, k3, k4 = jax.random.split(key, 4)
    bound1 = 1.0 / math.sqrt(INPUT_SIZE)
    bound2 = 1.0 / math.sqrt(HIDDEN_SIZE)
    # Stored transposed relative to torch's [out_features, in_features].
    w1 = jax.random.uniform(k1, (INPUT_SIZE, HIDDEN_SIZE), jnp.float32,
                            minval=-bound1, maxval=bound1)
    b1 = jax.random.uniform(k2, (1, HIDDEN_SIZE), jnp.float32,
                            minval=-bound1, maxval=bound1)
    w2 = jax.random.uniform(k3, (HIDDEN_SIZE, NUM_CLASSES), jnp.float32,
                            minval=-bound2, maxval=bound2)
    b2 = jax.random.uniform(k4, (1, NUM_CLASSES), jnp.float32,
                            minval=-bound2, maxval=bound2)
    return w1, b1, w2, b2


def reference_forward_bf16(x, w1, b1, w2, b2):
    """Reference applying the same bf16 rounding as the kernel."""
    xb = x.astype(jnp.bfloat16).astype(jnp.float32)
    w1b = w1.astype(jnp.bfloat16).astype(jnp.float32)
    w2b = w2.astype(jnp.bfloat16).astype(jnp.float32)
    u1 = xb @ w1b + b1
    v1 = jnp.maximum(u1, 0.0).astype(jnp.bfloat16).astype(jnp.float32)
    return v1 @ w2b + b2


def reference_forward_f32(x, w1, b1, w2, b2):
    u1 = x @ w1 + b1
    v1 = jnp.maximum(u1, 0.0)
    return v1 @ w2 + b2


if __name__ == "__main__":
    key = jax.random.PRNGKey(0)
    key_x, key_p = jax.random.split(key)

    batch = 8
    x = jax.random.normal(key_x, (batch, INPUT_SIZE), dtype=jnp.float32)
    w1, b1, w2, b2 = init_params(key_p)

    # One-time weight prep (pad + bf16 cast), reused for every forward call.
    params = jax.tree_util.tree_map(jax.block_until_ready,
                                    prepare_params(w1, b1, w2, b2))

    out = jax.block_until_ready(mlp_forward(x, params))
    assert out.shape == (batch, NUM_CLASSES)

    # Tight check against a reference that applies the same bf16 rounding.
    ref_bf16 = reference_forward_bf16(x, w1, b1, w2, b2)
    assert jnp.allclose(out, ref_bf16, atol=1e-2, rtol=1e-2), \
        f"max err vs bf16 ref: {jnp.max(jnp.abs(out - ref_bf16))}"

    # Loose check against the pure-f32 PyTorch-equivalent forward.
    ref_f32 = reference_forward_f32(x, w1, b1, w2, b2)
    assert jnp.allclose(out, ref_f32, atol=1e-1, rtol=1e-1), \
        f"max err vs f32 ref: {jnp.max(jnp.abs(out - ref_f32))}"

    # Non-divisible batch exercising the multi-step (>=2) tiled grid path.
    batch2 = 300
    x2 = jax.random.normal(key_x, (batch2, INPUT_SIZE), dtype=jnp.float32)
    out2 = jax.block_until_ready(mlp_forward(x2, params))
    ref2 = reference_forward_bf16(x2, w1, b1, w2, b2)
    assert out2.shape == (batch2, NUM_CLASSES)
    assert jnp.allclose(out2, ref2, atol=1e-2, rtol=1e-2), \
        f"max err vs bf16 ref (B=300): {jnp.max(jnp.abs(out2 - ref2))}"

    print("KERNEL_OK")
</pallas_src>

<mosaic_0001>
module attributes {stable_mosaic.version = 11 : i64} {
  func.func @mlp_kernel(%arg0: i32, %arg1: memref<16x784xf32, #tpu.memory_space<vmem>>, %arg2: memref<784x512xbf16, #tpu.memory_space<vmem>>, %arg3: memref<1x512xf32, #tpu.memory_space<vmem>>, %arg4: memref<512x10xbf16, #tpu.memory_space<vmem>>, %arg5: memref<1x10xf32, #tpu.memory_space<vmem>>, %arg6: memref<16x10xf32, #tpu.memory_space<vmem>>) attributes {dimension_semantics = [#tpu.dimension_semantics<parallel>], iteration_bounds = array<i64: 1>, scalar_prefetch = 0 : i64, scratch_operands = 0 : i64, tpu.core_type = #tpu.core_type<tc>, window_params = [{transform_indices = @transform_0, window_bounds = array<i64: 16, 784>}, {pipeline_mode = #tpu.pipeline_mode<synchronous>, transform_indices = @transform_1, window_bounds = array<i64: 784, 512>}, {pipeline_mode = #tpu.pipeline_mode<synchronous>, transform_indices = @transform_2, window_bounds = array<i64: 1, 512>}, {pipeline_mode = #tpu.pipeline_mode<synchronous>, transform_indices = @transform_3, window_bounds = array<i64: 512, 10>}, {pipeline_mode = #tpu.pipeline_mode<synchronous>, transform_indices = @transform_4, window_bounds = array<i64: 1, 10>}, {transform_indices = @transform_5, window_bounds = array<i64: 16, 10>}]} {
    %c0 = arith.constant 0 : index
    %c0_0 = arith.constant 0 : index
    %0 = vector.load %arg1[%c0, %c0_0] : memref<16x784xf32, #tpu.memory_space<vmem>>, vector<16x784xf32>
    %1 = arith.truncf %0 : vector<16x784xf32> to vector<16x784xbf16>
    %c0_1 = arith.constant 0 : index
    %c0_2 = arith.constant 0 : index
    %2 = vector.load %arg2[%c0_1, %c0_2] : memref<784x512xbf16, #tpu.memory_space<vmem>>, vector<784x512xbf16>
    %cst = arith.constant dense<0.000000e+00> : vector<16x512xf32>
    %3 = tpu.matmul %1, %2, %cst {dimension_numbers = #tpu.dot_dimension_numbers<[1], [0], [0], [1], [0, 0, 1, 1], [], []>} : vector<16x784xbf16>, vector<784x512xbf16>, vector<16x512xf32> -> vector<16x512xf32>
    %c0_3 = arith.constant 0 : index
    %c0_4 = arith.constant 0 : index
    %4 = vector.load %arg3[%c0_3, %c0_4] : memref<1x512xf32, #tpu.memory_space<vmem>>, vector<1x512xf32>
    %5 = vector.broadcast %4 : vector<1x512xf32> to vector<16x512xf32>
    %6 = arith.addf %3, %5 : vector<16x512xf32>
    %cst_5 = arith.constant 0.000000e+00 : f32
    %7 = vector.broadcast %cst_5 : f32 to vector<16x512xf32>
    %8 = arith.maximumf %6, %7 : vector<16x512xf32>
    %9 = arith.truncf %8 : vector<16x512xf32> to vector<16x512xbf16>
    %c0_6 = arith.constant 0 : index
    %c0_7 = arith.constant 0 : index
    %10 = vector.load %arg4[%c0_6, %c0_7] : memref<512x10xbf16, #tpu.memory_space<vmem>>, vector<512x10xbf16>
    %cst_8 = arith.constant dense<0.000000e+00> : vector<16x10xf32>
    %11 = tpu.matmul %9, %10, %cst_8 {dimension_numbers = #tpu.dot_dimension_numbers<[1], [0], [0], [1], [0, 0, 1, 1], [], []>} : vector<16x512xbf16>, vector<512x10xbf16>, vector<16x10xf32> -> vector<16x10xf32>
    %c0_9 = arith.constant 0 : index
    %c0_10 = arith.constant 0 : index
    %12 = vector.load %arg5[%c0_9, %c0_10] : memref<1x10xf32, #tpu.memory_space<vmem>>, vector<1x10xf32>
    %13 = vector.broadcast %12 : vector<1x10xf32> to vector<16x10xf32>
    %14 = arith.addf %11, %13 : vector<16x10xf32>
    %c0_11 = arith.constant 0 : index
    %c0_12 = arith.constant 0 : index
    %15 = vector.load %arg6[%c0_11, %c0_12] : memref<16x10xf32, #tpu.memory_space<vmem>>, vector<16x10xf32>
    tpu.vector_store %arg6[%c0_11, %c0_12], %14 {strides = array<i32>} : memref<16x10xf32, #tpu.memory_space<vmem>>, vector<16x10xf32>,
    return
  }
  func.func @transform_0(%arg0: i32) -> (i32, i32) {
    %c0_i32 = arith.constant 0 : i32
    %c0_i32_0 = arith.constant 0 : i32
    return %arg0, %c0_i32 : i32, i32
  }
  func.func @transform_1(%arg0: i32) -> (i32, i32) {
    %c0_i32 = arith.constant 0 : i32
    %c0_i32_0 = arith.constant 0 : i32
    %c0_i32_1 = arith.constant 0 : i32
    return %c0_i32, %c0_i32_0 : i32, i32
  }
  func.func @transform_2(%arg0: i32) -> (i32, i32) {
    %c0_i32 = arith.constant 0 : i32
    %c0_i32_0 = arith.constant 0 : i32
    %c0_i32_1 = arith.constant 0 : i32
    return %c0_i32, %c0_i32_0 : i32, i32
  }
  func.func @transform_3(%arg0: i32) -> (i32, i32) {
    %c0_i32 = arith.constant 0 : i32
    %c0_i32_0 = arith.constant 0 : i32
    %c0_i32_1 = arith.constant 0 : i32
    return %c0_i32, %c0_i32_0 : i32, i32
  }
  func.func @transform_4(%arg0: i32) -> (i32, i32) {
    %c0_i32 = arith.constant 0 : i32
    %c0_i32_0 = arith.constant 0 : i32
    %c0_i32_1 = arith.constant 0 : i32
    return %c0_i32, %c0_i32_0 : i32, i32
  }
  func.func @transform_5(%arg0: i32) -> (i32, i32) {
    %c0_i32 = arith.constant 0 : i32
    %c0_i32_0 = arith.constant 0 : i32
    return %arg0, %c0_i32 : i32, i32
  }
}

</mosaic_0001>

<bundles_post_ra>
// kernel: tpu_custom_call.1
= control target key start
LH: loop header
LB: loop body
LE: loop exit
PB: predicated region body
PF: predicated region fallthrough
CT: control target
= control target key end

     0   :  { %10 = vsyncpa [#allocation3], 0  ;;  %s2873_s0 = inlined_call_operand.vmem [shape: f32[16,784], index: 0, kind: input, shape index: {}]   ;;  %s2874_s1 = inlined_call_operand.hbm [shape: bf16[784,512], index: 1, kind: input, shape index: {}]   ;;  %s2875_s2 = inlined_call_operand.vmem [shape: f32[1,512], index: 2, kind: input, shape index: {}]   ;;  %s2876_s3 = inlined_call_operand.vmem [shape: bf16[512,10], index: 3, kind: input, shape index: {}]   ;;  %s2877_s4 = inlined_call_operand.vmem [shape: f32[1,10], index: 4, kind: input, shape index: {}]   ;;  %s2878_s5 = inlined_call_operand.hbm [shape: f32[16,10], index: 5, kind: output, shape index: {}]  }
   0x1   :  { %11 = vsyncpa [#allocation4], 0  ;;  %s2668_s18 = smov [#allocation2]   ;;  %s2620_s22 = scalar_lea.hbm %s2874_s1, 25088 }
   0x2   :  { %s19_s19 = sshll.u32 %s2668_s18, 4  ;;  %p2621_p0 = scmp.ne.s32.totalorder %s2874_s1, %s2620_s22  ;;  %s20_s19 = int_to_ptr.vmem [resolvable:$true] %s19_s19 }
   0x3   :  { %p2624_p1 = scmp.lt.u32.totalorder %s2620_s22, %s2874_s1 }
   0x5   :  { %p2626_p2 = pnand %p2624_p1, %p2621_p0 }
   0x7   :  { %2629 = shalt.err (!%p2626_p2)
}
   0x8   :  { %s2630_s27 = scalar_lea.vmem %s20_s19, 25088  ;;  %p2635_p4 = scmp.lt.s32.totalorder %s20_s19, %s20_s19 }
   0x9   :  { %p2631_p3 = scmp.ne.s32.totalorder %s20_s19, %s2630_s27  ;;  %p2636_p5 = scmp.lt.s32.totalorder %s2630_s27, %s2630_s27 }
   0xb   :  { %p2637_p6 = por %p2636_p5, %p2635_p4 }
   0xd   :  { %p2638_p7 = pnand %p2637_p6, %p2631_p3 }
   0xf   :  { %2641 = shalt.err (!%p2638_p7)
}
  0x10   :  { %s2669_s28 = smov 256   ;;  %s2670_s29 = smov 16  }
  0x11   :  { %25 = dma.hbm_to_vmem [thread:$0]  %s2874_s1, 25088, %s20_s19, [#allocation3], %s2669_s28, %s2669_s28, %s2670_s29  }
  0x12   :  { %2664 = dma.done.wait [#allocation3], 25088  }
  0x13   :  { %2665 = vsyncadd [#allocation3], 4294942208  ;;  %v2294_v0 = vld [vmem:[#allocation2 + $0x4] ss:$16 sps:$4 sm:$0xff]   ;;  %v2296_v1 = vld [vmem:[#allocation2 + $0xc] ss:$16 sps:$4 sm:$0xff]  }
  0x14   :  { %1259 = vmatprep.subr.bf16.mxu0 %v2294_v0  ;;  %v2298_v2 = vld [vmem:[#allocation2] ss:$16 sps:$4 sm:$0xff]   ;;  %v2299_v3 = vld [vmem:[#allocation2 + $0x8] ss:$16 sps:$4 sm:$0xff]   ;;  %1431 = vmatprep.subr.bf16.mxu1 %v2296_v1  ;;  %v2300_v4 = vld [vmem:[#allocation2 + $0x24] ss:$16 sps:$4 sm:$0xff]  }
  0x15   :  { %1260 = vmatpush1.bf16.msra.mxu0 %v2298_v2  ;;  %1432 = vmatpush1.bf16.msra.mxu1 %v2299_v3  ;;  %v2302_v5 = vld [vmem:[#allocation2 + $0x2c] ss:$16 sps:$4 sm:$0xff]   ;;  %v2304_v6 = vld [vmem:[#allocation2 + $0x20] ss:$16 sps:$4 sm:$0xff]   ;;  %v2305_v7 = vld [vmem:[#allocation2 + $0x28] ss:$16 sps:$4 sm:$0xff]  }
  0x16   :  { %1261 = vmatprep.subr.bf16.mxu0 %v2300_v4  ;;  %1433 = vmatprep.subr.bf16.mxu1 %v2302_v5  ;;  %v2306_v8 = vld [vmem:[#allocation2 + $0x44] ss:$16 sps:$4 sm:$0xff]   ;;  %v2308_v9 = vld [vmem:[#allocation2 + $0x4c] ss:$16 sps:$4 sm:$0xff]   ;;  %v2310_v10 = vld [vmem:[#allocation2 + $0x40] ss:$16 sps:$4 sm:$0xff]  }
  0x17   :  { %v2311_v11 = vld [vmem:[#allocation2 + $0x48] ss:$16 sps:$4 sm:$0xff]   ;;  %v2312_v12 = vld [vmem:[#allocation2 + $0x64] ss:$16 sps:$4 sm:$0xff]   ;;  %v2314_v13 = vld [vmem:[#allocation2 + $0x6c] ss:$16 sps:$4 sm:$0xff]  }
  0x18   :  { %v2316_v14 = vld [vmem:[#allocation2 + $0x60] ss:$16 sps:$4 sm:$0xff]   ;;  %v2317_v15 = vld [vmem:[#allocation2 + $0x68] ss:$16 sps:$4 sm:$0xff]   ;;  %v2318_v16 = vld [vmem:[#allocation2 + $0x84] ss:$16 sps:$4 sm:$0xff]  }
  0x19   :  { %1262 = vmatpush1.bf16.msra.mxu0 %v2304_v6  ;;  %1434 = vmatpush1.bf16.msra.mxu1 %v2305_v7  ;;  %v2320_v17 = vld [vmem:[#allocation2 + $0x8c] ss:$16 sps:$4 sm:$0xff]   ;;  %v2322_v18 = vld [vmem:[#allocation2 + $0x80] ss:$16 sps:$4 sm:$0xff]   ;;  %v2323_v19 = vld [vmem:[#allocation2 + $0x88] ss:$16 sps:$4 sm:$0xff]  }
  0x1a   :  { %1263 = vmatprep.subr.bf16.mxu0 %v2306_v8  ;;  %1435 = vmatprep.subr.bf16.mxu1 %v2308_v9  ;;  %v2324_v20 = vld [vmem:[#allocation2 + $0xa4] ss:$16 sps:$4 sm:$0xff]   ;;  %v2326_v21 = vld [vmem:[#allocation2 + $0xac] ss:$16 sps:$4 sm:$0xff]   ;;  %v2328_v22 = vld [vmem:[#allocation2 + $0xa0] ss:$16 sps:$4 sm:$0xff]  }
  0x1b   :  { %v2329_v23 = vld [vmem:[#allocation2 + $0xa8] ss:$16 sps:$4 sm:$0xff]   ;;  %v2330_v24 = vld [vmem:[#allocation2 + $0xc4] ss:$16 sps:$4 sm:$0xff]   ;;  %v2332_v25 = vld [vmem:[#allocation2 + $0xcc] ss:$16 sps:$4 sm:$0xff]  }
  0x1c   :  { %v2334_v26 = vld [vmem:[#allocation2 + $0xc0] ss:$16 sps:$4 sm:$0xff]   ;;  %v2335_v27 = vld [vmem:[#allocation2 + $0xc8] ss:$16 sps:$4 sm:$0xff]   ;;  %v2336_v28 = vld [vmem:[#allocation2 + $0xe4] ss:$16 sps:$4 sm:$0xff]  }
  0x1d   :  { %1264 = vmatpush1.bf16.msra.mxu0 %v2310_v10  ;;  %1436 = vmatpush1.bf16.msra.mxu1 %v2311_v11  ;;  %v2338_v29 = vld [vmem:[#allocation2 + $0xec] ss:$16 sps:$4 sm:$0xff]   ;;  %v2340_v30 = vld [vmem:[#allocation2 + $0xe0] ss:$16 sps:$4 sm:$0xff]   ;;  %v2341_v31 = vld [vmem:[#allocation2 + $0xe8] ss:$16 sps:$4 sm:$0xff]  }
  0x1e   :  { %1265 = vmatprep.subr.bf16.mxu0 %v2312_v12  ;;  %1437 = vmatprep.subr.bf16.mxu1 %v2314_v13  ;;  %v2342_v32 = vld [vmem:[#allocation2 + $0x104] ss:$16 sps:$4 sm:$0xff]   ;;  %v2344_v33 = vld [vmem:[#allocation2 + $0x10c] ss:$16 sps:$4 sm:$0xff]   ;;  %v2346_v34 = vld [vmem:[#allocation2 + $0x100] ss:$16 sps:$4 sm:$0xff]  }
  0x1f   :  { %v2347_v35 = vld [vmem:[#allocation2 + $0x108] ss:$16 sps:$4 sm:$0xff]   ;;  %v2348_v36 = vld [vmem:[#allocation2 + $0x124] ss:$16 sps:$4 sm:$0xff]   ;;  %v2350_v37 = vld [vmem:[#allocation2 + $0x12c] ss:$16 sps:$4 sm:$0xff]  }
  0x20   :  { %v2352_v38 = vld [vmem:[#allocation2 + $0x120] ss:$16 sps:$4 sm:$0xff]   ;;  %v2353_v39 = vld [vmem:[#allocation2 + $0x128] ss:$16 sps:$4 sm:$0xff]   ;;  %v2354_v40 = vld [vmem:[#allocation2 + $0x144] ss:$16 sps:$4 sm:$0xff]  }
  0x21   :  { %1266 = vmatpush1.bf16.msra.mxu0 %v2316_v14  ;;  %1438 = vmatpush1.bf16.msra.mxu1 %v2317_v15  ;;  %v2356_v41 = vld [vmem:[#allocation2 + $0x14c] ss:$16 sps:$4 sm:$0xff]   ;;  %v2358_v42 = vld [vmem:[#allocation2 + $0x140] ss:$16 sps:$4 sm:$0xff]   ;;  %v2359_v43 = vld [vmem:[#allocation2 + $0x148] ss:$16 sps:$4 sm:$0xff]  }
  0x22   :  { %1267 = vmatprep.subr.bf16.mxu0 %v2318_v16  ;;  %1439 = vmatprep.subr.bf16.mxu1 %v2320_v17  ;;  %v2360_v44 = vld [vmem:[#allocation2 + $0x164] ss:$16 sps:$4 sm:$0xff]   ;;  %v2362_v45 = vld [vmem:[#allocation2 + $0x16c] ss:$16 sps:$4 sm:$0xff]   ;;  %v2364_v48 = vld [vmem:[#allocation2 + $0x160] ss:$16 sps:$4 sm:$0xff]  }
  0x23   :  { %v37_v46 = vld [vmem:[%s2873_s0 + $0x8] sm:$0xff]  ;;  %v44_v47 = vld [vmem:[%s2873_s0 + $0x40] sm:$0xff]  ;;  %v43_v5 = vld [vmem:[%s2873_s0 + $0x38] sm:$0xff]  ;;  %vm1255_vm0 = vcmask 130048   ;;  %vm1960_vm1 = vcmask 80896  }
  0x24   :  { %v2365_v49 = vld [vmem:[#allocation2 + $0x168] ss:$16 sps:$4 sm:$0xff]   ;;  %v51_v50 = vpack.c.bf16 %v44_v47, %v37_v46  ;;  %v2366_v51 = vld [vmem:[#allocation2 + $0x184] ss:$16 sps:$4 sm:$0xff]   ;;  %v2368_v52 = vld [vmem:[#allocation2 + $0x18c] ss:$16 sps:$4 sm:$0xff]  }
  0x25   :  { %1268 = vmatpush1.bf16.msra.mxu0 %v2322_v18  ;;  %1440 = vmatpush1.bf16.msra.mxu1 %v2323_v19  ;;  %v2370_v53 = vld [vmem:[#allocation2 + $0x180] ss:$16 sps:$4 sm:$0xff]   ;;  %v2371_v54 = vld [vmem:[#allocation2 + $0x188] ss:$16 sps:$4 sm:$0xff]   ;;  %v2372_v55 = vld [vmem:[#allocation2 + $0x1a4] ss:$16 sps:$4 sm:$0xff]  }
  0x26   :  { %1269 = vmatprep.subr.bf16.mxu0 %v2324_v20  ;;  %1441 = vmatprep.subr.bf16.mxu1 %v2326_v21  ;;  %v2374_v56 = vld [vmem:[#allocation2 + $0x1ac] ss:$16 sps:$4 sm:$0xff]   ;;  %v2376_v57 = vld [vmem:[#allocation2 + $0x1a0] ss:$16 sps:$4 sm:$0xff]   ;;  %v2377_v58 = vld [vmem:[#allocation2 + $0x1a8] ss:$16 sps:$4 sm:$0xff]  }
  0x27   :  { %1291 = vmatprep.mubr.bf16.mxu0 %v51_v50  ;;  %1463 = vmatprep.mubr.bf16.mxu1 %v51_v50  ;;  %v2378_v59 = vld [vmem:[#allocation2 + $0x1c4] ss:$16 sps:$4 sm:$0xff]   ;;  %v2380_v60 = vld [vmem:[#allocation2 + $0x1cc] ss:$16 sps:$4 sm:$0xff]   ;;  %v2382_v61 = vld [vmem:[#allocation2 + $0x1c0] ss:$16 sps:$4 sm:$0xff]  }
  0x28   :  { %v2383_v62 = vld [vmem:[#allocation2 + $0x1c8] ss:$16 sps:$4 sm:$0xff]   ;;  %v2384_v63 = vld [vmem:[#allocation2 + $0x1e4] ss:$16 sps:$4 sm:$0xff]   ;;  %v2386_v0 = vld [vmem:[#allocation2 + $0x1ec] ss:$16 sps:$4 sm:$0xff]  }
  0x29   :  { %1270 = vmatpush1.bf16.msra.mxu0 %v2328_v22  ;;  %1442 = vmatpush1.bf16.msra.mxu1 %v2329_v23  ;;  %v2388_v1 = vld [vmem:[#allocation2 + $0x1e0] ss:$16 sps:$4 sm:$0xff]   ;;  %v2389_v2 = vld [vmem:[#allocation2 + $0x1e8] ss:$16 sps:$4 sm:$0xff]   ;;  %v2392_v3 = vld [vmem:[#allocation2 + $0x204] ss:$16 sps:$4 sm:$0xff]  }
  0x2a   :  { %1271 = vmatprep.subr.bf16.mxu0 %v2330_v24  ;;  %1443 = vmatprep.subr.bf16.mxu1 %v2332_v25  ;;  %v36_v4 = vld [vmem:[%s2873_s0] sm:$0xff]  ;;  %v2395_v6 = vld [vmem:[#allocation2 + $0x20c] ss:$16 sps:$4 sm:$0xff]   ;;  %v2393_v8 = vld [vmem:[#allocation2 + $0x208] ss:$16 sps:$4 sm:$0xff]  }
  0x2b   :  { %v2390_v7 = vld [vmem:[#allocation2 + $0x200] ss:$16 sps:$4 sm:$0xff]   ;;  %v50_v9 = vpack.c.bf16 %v43_v5, %v36_v4  ;;  %v2398_v10 = vld [vmem:[#allocation2 + $0x224] ss:$16 sps:$4 sm:$0xff]   ;;  %v2401_v11 = vld [vmem:[#allocation2 + $0x22c] ss:$16 sps:$4 sm:$0xff]  }
  0x2c   :  { %v2396_v12 = vld [vmem:[#allocation2 + $0x220] ss:$16 sps:$4 sm:$0xff]   ;;  %v2399_v13 = vld [vmem:[#allocation2 + $0x228] ss:$16 sps:$4 sm:$0xff]   ;;  %v2404_v14 = vld [vmem:[#allocation2 + $0x244] ss:$16 sps:$4 sm:$0xff]  }
  0x2d   :  { %1272 = vmatpush1.bf16.msra.mxu0 %v2334_v26  ;;  %1444 = vmatpush1.bf16.msra.mxu1 %v2335_v27  ;;  %v2407_v15 = vld [vmem:[#allocation2 + $0x24c] ss:$16 sps:$4 sm:$0xff]   ;;  %v2402_v16 = vld [vmem:[#allocation2 + $0x240] ss:$16 sps:$4 sm:$0xff]   ;;  %v2405_v17 = vld [vmem:[#allocation2 + $0x248] ss:$16 sps:$4 sm:$0xff]  }
  0x2e   :  { %1273 = vmatprep.subr.bf16.mxu0 %v2336_v28  ;;  %1445 = vmatprep.subr.bf16.mxu1 %v2338_v29  ;;  %v2410_v18 = vld [vmem:[#allocation2 + $0x264] ss:$16 sps:$4 sm:$0xff]   ;;  %v2413_v19 = vld [vmem:[#allocation2 + $0x26c] ss:$16 sps:$4 sm:$0xff]   ;;  %v2408_v20 = vld [vmem:[#allocation2 + $0x260] ss:$16 sps:$4 sm:$0xff]  }
  0x2f   :  { %v2411_v21 = vld [vmem:[#allocation2 + $0x268] ss:$16 sps:$4 sm:$0xff]   ;;  %v2416_v22 = vld [vmem:[#allocation2 + $0x284] ss:$16 sps:$4 sm:$0xff]   ;;  %v2419_v23 = vld [vmem:[#allocation2 + $0x28c] ss:$16 sps:$4 sm:$0xff]  }
  0x30   :  { %v2414_v24 = vld [vmem:[#allocation2 + $0x280] ss:$16 sps:$4 sm:$0xff]   ;;  %v2417_v25 = vld [vmem:[#allocation2 + $0x288] ss:$16 sps:$4 sm:$0xff]   ;;  %v2422_v26 = vld [vmem:[#allocation2 + $0x2a4] ss:$16 sps:$4 sm:$0xff]  }
  0x31   :  { %1274 = vmatpush1.bf16.msra.mxu0 %v2340_v30  ;;  %1446 = vmatpush1.bf16.msra.mxu1 %v2341_v31  ;;  %v2425_v27 = vld [vmem:[#allocation2 + $0x2ac] ss:$16 sps:$4 sm:$0xff]   ;;  %v2420_v28 = vld [vmem:[#allocation2 + $0x2a0] ss:$16 sps:$4 sm:$0xff]   ;;  %v2423_v29 = vld [vmem:[#allocation2 + $0x2a8] ss:$16 sps:$4 sm:$0xff]  }
  0x32   :  { %1275 = vmatprep.subr.bf16.mxu0 %v2342_v32  ;;  %1447 = vmatprep.subr.bf16.mxu1 %v2344_v33  ;;  %v2428_v30 = vld [vmem:[#allocation2 + $0x2c4] ss:$16 sps:$4 sm:$0xff]   ;;  %v2431_v31 = vld [vmem:[#allocation2 + $0x2cc] ss:$16 sps:$4 sm:$0xff]   ;;  %v2444_v47 = vld [vmem:[#allocation2 + $0x320] ss:$16 sps:$4 sm:$0xff]  }
  0x33   :  { %v39_v32 = vld [vmem:[%s2873_s0 + $0x18] sm:$0xff]  ;;  %v46_v33 = vld [vmem:[%s2873_s0 + $0x50] sm:$0xff] }
  0x34   :  { %v2449_v46 = vld [vmem:[#allocation2 + $0x32c] ss:$16 sps:$4 sm:$0xff]   ;;  %v2477_v4 = vld [vmem:[#allocation2 + $0x3c8] ss:$16 sps:$4 sm:$0xff]   ;;  %v2482_v5 = vld [vmem:[#allocation2 + $0x3e4] ss:$16 sps:$4 sm:$0xff]  }
  0x35   :  { %1276 = vmatpush1.bf16.msra.mxu0 %v2346_v34  ;;  %1448 = vmatpush1.bf16.msra.mxu1 %v2347_v35  ;;  %v2426_v34 = vld [vmem:[#allocation2 + $0x2c0] ss:$16 sps:$4 sm:$0xff]   ;;  %v2429_v35 = vld [vmem:[#allocation2 + $0x2c8] ss:$16 sps:$4 sm:$0xff]   ;;  %v2455_v50 = vld [vmem:[#allocation2 + $0x34c] ss:$16 sps:$4 sm:$0xff]  }
  0x36   :  { %1277 = vmatprep.subr.bf16.mxu0 %v2348_v36  ;;  %1449 = vmatprep.subr.bf16.mxu1 %v2350_v37  ;;  %v53_v36 = vpack.c.bf16 %v46_v33, %v39_v32  ;;  %v2434_v37 = vld [vmem:[#allocation2 + $0x2e4] ss:$16 sps:$4 sm:$0xff]   ;;  %v2515_v32 = vld [vmem:[#allocation2 + $0x48c] ss:$16 sps:$4 sm:$0xff]   ;;  %v2510_v33 = vld [vmem:[#allocation2 + $0x480] ss:$16 sps:$4 sm:$0xff]  }
  0x39   :  { %1278 = vmatpush1.bf16.msra.mxu0 %v2352_v38  ;;  %1450 = vmatpush1.bf16.msra.mxu1 %v2353_v39  ;;  %v2437_v38 = vld [vmem:[#allocation2 + $0x2ec] ss:$16 sps:$4 sm:$0xff]   ;;  %v2432_v39 = vld [vmem:[#allocation2 + $0x2e0] ss:$16 sps:$4 sm:$0xff]  }
  0x3a   :  { %1279 = vmatprep.subr.bf16.mxu0 %v2354_v40  ;;  %1451 = vmatprep.subr.bf16.mxu1 %v2356_v41  ;;  %v2435_v40 = vld [vmem:[#allocation2 + $0x2e8] ss:$16 sps:$4 sm:$0xff]   ;;  %v2440_v41 = vld [vmem:[#allocation2 + $0x304] ss:$16 sps:$4 sm:$0xff]  }
  0x3d   :  { %1280 = vmatpush1.bf16.msra.mxu0 %v2358_v42  ;;  %1452 = vmatpush1.bf16.msra.mxu1 %v2359_v43  ;;  %v2443_v42 = vld [vmem:[#allocation2 + $0x30c] ss:$16 sps:$4 sm:$0xff]   ;;  %v2438_v43 = vld [vmem:[#allocation2 + $0x300] ss:$16 sps:$4 sm:$0xff]  }
  0x3e   :  { %1281 = vmatprep.subr.bf16.mxu0 %v2360_v44  ;;  %1453 = vmatprep.subr.bf16.mxu1 %v2362_v45  ;;  %v2441_v44 = vld [vmem:[#allocation2 + $0x308] ss:$16 sps:$4 sm:$0xff]   ;;  %v2446_v45 = vld [vmem:[#allocation2 + $0x324] ss:$16 sps:$4 sm:$0xff]  }
  0x41   :  { %1282 = vmatpush1.bf16.msra.mxu0 %v2364_v48  ;;  %1454 = vmatpush1.bf16.msra.mxu1 %v2365_v49  ;;  %v2447_v48 = vld [vmem:[#allocation2 + $0x328] ss:$16 sps:$4 sm:$0xff]   ;;  %v2452_v49 = vld [vmem:[#allocation2 + $0x344] ss:$16 sps:$4 sm:$0xff]  }
  0x42   :  { %1283 = vmatprep.subr.bf16.mxu0 %v2366_v51  ;;  %1455 = vmatprep.subr.bf16.mxu1 %v2368_v52  ;;  %v2450_v51 = vld [vmem:[#allocation2 + $0x340] ss:$16 sps:$4 sm:$0xff]   ;;  %v2453_v52 = vld [vmem:[#allocation2 + $0x348] ss:$16 sps:$4 sm:$0xff]  }
  0x45   :  { %1284 = vmatpush1.bf16.msra.mxu0 %v2370_v53  ;;  %1456 = vmatpush1.bf16.msra.mxu1 %v2371_v54  ;;  %v2458_v53 = vld [vmem:[#allocation2 + $0x364] ss:$16 sps:$4 sm:$0xff]   ;;  %v2461_v54 = vld [vmem:[#allocation2 + $0x36c] ss:$16 sps:$4 sm:$0xff]  }
  0x46   :  { %1285 = vmatprep.subr.bf16.mxu0 %v2372_v55  ;;  %1457 = vmatprep.subr.bf16.mxu1 %v2374_v56  ;;  %v2456_v55 = vld [vmem:[#allocation2 + $0x360] ss:$16 sps:$4 sm:$0xff]   ;;  %v2459_v56 = vld [vmem:[#allocation2 + $0x368] ss:$16 sps:$4 sm:$0xff]  }
  0x49   :  { %1286 = vmatpush1.bf16.msra.mxu0 %v2376_v57  ;;  %1458 = vmatpush1.bf16.msra.mxu1 %v2377_v58  ;;  %v2464_v57 = vld [vmem:[#allocation2 + $0x384] ss:$16 sps:$4 sm:$0xff]   ;;  %v2467_v58 = vld [vmem:[#allocation2 + $0x38c] ss:$16 sps:$4 sm:$0xff]  }
  0x4a   :  { %1287 = vmatprep.subr.bf16.mxu0 %v2378_v59  ;;  %1459 = vmatprep.subr.bf16.mxu1 %v2380_v60  ;;  %v2462_v59 = vld [vmem:[#allocation2 + $0x380] ss:$16 sps:$4 sm:$0xff]   ;;  %v2465_v60 = vld [vmem:[#allocation2 + $0x388] ss:$16 sps:$4 sm:$0xff]  }
  0x4d   :  { %1288 = vmatpush1.bf16.msra.mxu0 %v2382_v61  ;;  %1460 = vmatpush1.bf16.msra.mxu1 %v2383_v62  ;;  %v2470_v61 = vld [vmem:[#allocation2 + $0x3a4] ss:$16 sps:$4 sm:$0xff]   ;;  %v2473_v62 = vld [vmem:[#allocation2 + $0x3ac] ss:$16 sps:$4 sm:$0xff]  }
  0x4e   :  { %1289 = vmatprep.subr.bf16.mxu0 %v2384_v63  ;;  %1461 = vmatprep.subr.bf16.mxu1 %v2386_v0  ;;  %v2468_v63 = vld [vmem:[#allocation2 + $0x3a0] ss:$16 sps:$4 sm:$0xff]   ;;  %v2471_v0 = vld [vmem:[#allocation2 + $0x3a8] ss:$16 sps:$4 sm:$0xff]  }
  0x51   :  { %1290 = vmatpush1.bf16.msra.mxu0 %v2388_v1  ;;  %1462 = vmatpush1.bf16.msra.mxu1 %v2389_v2  ;;  %v2476_v1 = vld [vmem:[#allocation2 + $0x3c4] ss:$16 sps:$4 sm:$0xff]   ;;  %v2479_v2 = vld [vmem:[#allocation2 + $0x3cc] ss:$16 sps:$4 sm:$0xff]  }
  0x52   :  { %1302 = vmatprep.subr.bf16.mxu0 %v2392_v3  ;;  %1474 = vmatprep.subr.bf16.mxu1 %v2395_v6  ;;  %v2474_v3 = vld [vmem:[#allocation2 + $0x3c0] ss:$16 sps:$4 sm:$0xff]   ;;  %v2485_v6 = vld [vmem:[#allocation2 + $0x3ec] ss:$16 sps:$4 sm:$0xff]  }
  0x54   :  { %1292 = vmatmul.mubr.bf16.vlgmr.msra.gmra.mrb[0].mxu0 %v50_v9  ;;  %1464 = vmatmul.mubr.bf16.vlgmr.msra.gmra.mrb[0].mxu1 %v50_v9  ;;  %v2488_v9 = vld [vmem:[#allocation2 + $0x404] ss:$16 sps:$4 sm:$0xff]  }
  0x55   :  { %1303 = vmatpush1.bf16.msra.mxu0 %v2390_v7  ;;  %1475 = vmatpush1.bf16.msra.mxu1 %v2393_v8  ;;  %v2480_v7 = vld [vmem:[#allocation2 + $0x3e0] ss:$16 sps:$4 sm:$0xff]   ;;  %v2483_v8 = vld [vmem:[#allocation2 + $0x3e8] ss:$16 sps:$4 sm:$0xff]  }
  0x56   :  { %1304 = vmatprep.subr.bf16.mxu0 %v2398_v10  ;;  %1476 = vmatprep.subr.bf16.mxu1 %v2401_v11  ;;  %v38_v10 = vld [vmem:[%s2873_s0 + $0x10] sm:$0xff]  ;;  %v45_v11 = vld [vmem:[%s2873_s0 + $0x48] sm:$0xff] }
  0x57   :  { %1334 = vmatprep.mubr.bf16.mxu0 %v53_v36  ;;  %1506 = vmatprep.mubr.bf16.mxu1 %v53_v36  ;;  %v2521_v36 = vld [vmem:[#allocation2 + $0x4ac] ss:$16 sps:$4 sm:$0xff]  }
  0x59   :  { %1305 = vmatpush1.bf16.msra.mxu0 %v2396_v12  ;;  %1477 = vmatpush1.bf16.msra.mxu1 %v2399_v13  ;;  %v2491_v12 = vld [vmem:[#allocation2 + $0x40c] ss:$16 sps:$4 sm:$0xff]   ;;  %v2486_v13 = vld [vmem:[#allocation2 + $0x400] ss:$16 sps:$4 sm:$0xff]  }
  0x5a   :  { %1306 = vmatprep.subr.bf16.mxu0 %v2404_v14  ;;  %1478 = vmatprep.subr.bf16.mxu1 %v2407_v15  ;;  %v2489_v14 = vld [vmem:[#allocation2 + $0x408] ss:$16 sps:$4 sm:$0xff]   ;;  %v52_v15 = vpack.c.bf16 %v45_v11, %v38_v10  ;;  %v2578_v11 = vld [vmem:[#allocation2 + $0x5e4] ss:$16 sps:$4 sm:$0xff]  }
  0x5b   :  { %v2573_v10 = vld [vmem:[#allocation2 + $0x5c8] ss:$16 sps:$4 sm:$0xff]  }
  0x5d   :  { %1307 = vmatpush1.bf16.msra.mxu0 %v2402_v16  ;;  %1479 = vmatpush1.bf16.msra.mxu1 %v2405_v17  ;;  %v2494_v16 = vld [vmem:[#allocation2 + $0x424] ss:$16 sps:$4 sm:$0xff]   ;;  %v2497_v17 = vld [vmem:[#allocation2 + $0x42c] ss:$16 sps:$4 sm:$0xff]  }
  0x5e   :  { %1308 = vmatprep.subr.bf16.mxu0 %v2410_v18  ;;  %1480 = vmatprep.subr.bf16.mxu1 %v2413_v19  ;;  %v41_v18 = vld [vmem:[%s2873_s0 + $0x28] sm:$0xff]  ;;  %v2492_v19 = vld [vmem:[#allocation2 + $0x420] ss:$16 sps:$4 sm:$0xff]  }
  0x61   :  { %1309 = vmatpush1.bf16.msra.mxu0 %v2408_v20  ;;  %1481 = vmatpush1.bf16.msra.mxu1 %v2411_v21  ;;  %v2495_v20 = vld [vmem:[#allocation2 + $0x428] ss:$16 sps:$4 sm:$0xff]   ;;  %v48_v21 = vld [vmem:[%s2873_s0 + $0x60] sm:$0xff] }
  0x62   :  { %1310 = vmatprep.subr.bf16.mxu0 %v2416_v22  ;;  %1482 = vmatprep.subr.bf16.mxu1 %v2419_v23  ;;  %v2500_v22 = vld [vmem:[#allocation2 + $0x444] ss:$16 sps:$4 sm:$0xff]   ;;  %v55_v23 = vpack.c.bf16 %v48_v21, %v41_v18  ;;  %v2587_v18 = vld [vmem:[#allocation2 + $0x60c] ss:$16 sps:$4 sm:$0xff]   ;;  %v2585_v21 = vld [vmem:[#allocation2 + $0x608] ss:$16 sps:$4 sm:$0xff]  }
  0x65   :  { %1311 = vmatpush1.bf16.msra.mxu0 %v2414_v24  ;;  %1483 = vmatpush1.bf16.msra.mxu1 %v2417_v25  ;;  %v2503_v24 = vld [vmem:[#allocation2 + $0x44c] ss:$16 sps:$4 sm:$0xff]   ;;  %v2498_v25 = vld [vmem:[#allocation2 + $0x440] ss:$16 sps:$4 sm:$0xff]  }
  0x66   :  { %1312 = vmatprep.subr.bf16.mxu0 %v2422_v26  ;;  %1484 = vmatprep.subr.bf16.mxu1 %v2425_v27  ;;  %v2501_v26 = vld [vmem:[#allocation2 + $0x448] ss:$16 sps:$4 sm:$0xff]   ;;  %v2506_v27 = vld [vmem:[#allocation2 + $0x464] ss:$16 sps:$4 sm:$0xff]  }
  0x69   :  { %1313 = vmatpush1.bf16.msra.mxu0 %v2420_v28  ;;  %1485 = vmatpush1.bf16.msra.mxu1 %v2423_v29  ;;  %v2509_v28 = vld [vmem:[#allocation2 + $0x46c] ss:$16 sps:$4 sm:$0xff]   ;;  %v2504_v29 = vld [vmem:[#allocation2 + $0x460] ss:$16 sps:$4 sm:$0xff]  }
  0x6a   :  { %1314 = vmatprep.subr.bf16.mxu0 %v2428_v30  ;;  %1486 = vmatprep.subr.bf16.mxu1 %v2431_v31  ;;  %v2507_v30 = vld [vmem:[#allocation2 + $0x468] ss:$16 sps:$4 sm:$0xff]   ;;  %v2512_v31 = vld [vmem:[#allocation2 + $0x484] ss:$16 sps:$4 sm:$0xff]  }
  0x6d   :  { %1315 = vmatpush1.bf16.msra.mxu0 %v2426_v34  ;;  %1487 = vmatpush1.bf16.msra.mxu1 %v2429_v35  ;;  %v2513_v34 = vld [vmem:[#allocation2 + $0x488] ss:$16 sps:$4 sm:$0xff]   ;;  %v2518_v35 = vld [vmem:[#allocation2 + $0x4a4] ss:$16 sps:$4 sm:$0xff]  }
  0x6e   :  { %1316 = vmatprep.subr.bf16.mxu0 %v2434_v37  ;;  %1488 = vmatprep.subr.bf16.mxu1 %v2437_v38  ;;  %v2516_v37 = vld [vmem:[#allocation2 + $0x4a0] ss:$16 sps:$4 sm:$0xff]   ;;  %v2519_v38 = vld [vmem:[#allocation2 + $0x4a8] ss:$16 sps:$4 sm:$0xff]  }
  0x71   :  { %1317 = vmatpush1.bf16.msra.mxu0 %v2432_v39  ;;  %1489 = vmatpush1.bf16.msra.mxu1 %v2435_v40  ;;  %v2524_v39 = vld [vmem:[#allocation2 + $0x4c4] ss:$16 sps:$4 sm:$0xff]   ;;  %v2527_v40 = vld [vmem:[#allocation2 + $0x4cc] ss:$16 sps:$4 sm:$0xff]  }
  0x72   :  { %1318 = vmatprep.subr.bf16.mxu0 %v2440_v41  ;;  %1490 = vmatprep.subr.bf16.mxu1 %v2443_v42  ;;  %v2522_v41 = vld [vmem:[#allocation2 + $0x4c0] ss:$16 sps:$4 sm:$0xff]   ;;  %v2525_v42 = vld [vmem:[#allocation2 + $0x4c8] ss:$16 sps:$4 sm:$0xff]  }
  0x75   :  { %1319 = vmatpush1.bf16.msra.mxu0 %v2438_v43  ;;  %1491 = vmatpush1.bf16.msra.mxu1 %v2441_v44  ;;  %v2530_v43 = vld [vmem:[#allocation2 + $0x4e4] ss:$16 sps:$4 sm:$0xff]   ;;  %v2533_v44 = vld [vmem:[#allocation2 + $0x4ec] ss:$16 sps:$4 sm:$0xff]  }
  0x76   :  { %1320 = vmatprep.subr.bf16.mxu0 %v2446_v45  ;;  %1492 = vmatprep.subr.bf16.mxu1 %v2449_v46  ;;  %v2528_v45 = vld [vmem:[#allocation2 + $0x4e0] ss:$16 sps:$4 sm:$0xff]   ;;  %v2531_v46 = vld [vmem:[#allocation2 + $0x4e8] ss:$16 sps:$4 sm:$0xff]  }
  0x79   :  { %1321 = vmatpush1.bf16.msra.mxu0 %v2444_v47  ;;  %1493 = vmatpush1.bf16.msra.mxu1 %v2447_v48  ;;  %v2536_v47 = vld [vmem:[#allocation2 + $0x504] ss:$16 sps:$4 sm:$0xff]   ;;  %v2539_v48 = vld [vmem:[#allocation2 + $0x50c] ss:$16 sps:$4 sm:$0xff]  }
  0x7a   :  { %1322 = vmatprep.subr.bf16.mxu0 %v2452_v49  ;;  %1494 = vmatprep.subr.bf16.mxu1 %v2455_v50  ;;  %v2534_v49 = vld [vmem:[#allocation2 + $0x500] ss:$16 sps:$4 sm:$0xff]   ;;  %v2537_v50 = vld [vmem:[#allocation2 + $0x508] ss:$16 sps:$4 sm:$0xff]  }
  0x7d   :  { %1323 = vmatpush1.bf16.msra.mxu0 %v2450_v51  ;;  %1495 = vmatpush1.bf16.msra.mxu1 %v2453_v52  ;;  %v2542_v51 = vld [vmem:[#allocation2 + $0x524] ss:$16 sps:$4 sm:$0xff]   ;;  %v2545_v52 = vld [vmem:[#allocation2 + $0x52c] ss:$16 sps:$4 sm:$0xff]  }
  0x7e   :  { %1324 = vmatprep.subr.bf16.mxu0 %v2458_v53  ;;  %1496 = vmatprep.subr.bf16.mxu1 %v2461_v54  ;;  %v2540_v53 = vld [vmem:[#allocation2 + $0x520] ss:$16 sps:$4 sm:$0xff]   ;;  %v2543_v54 = vld [vmem:[#allocation2 + $0x528] ss:$16 sps:$4 sm:$0xff]  }
  0x81   :  { %1325 = vmatpush1.bf16.msra.mxu0 %v2456_v55  ;;  %1497 = vmatpush1.bf16.msra.mxu1 %v2459_v56  ;;  %v2548_v55 = vld [vmem:[#allocation2 + $0x544] ss:$16 sps:$4 sm:$0xff]   ;;  %v2551_v56 = vld [vmem:[#allocation2 + $0x54c] ss:$16 sps:$4 sm:$0xff]  }
  0x82   :  { %1326 = vmatprep.subr.bf16.mxu0 %v2464_v57  ;;  %1498 = vmatprep.subr.bf16.mxu1 %v2467_v58  ;;  %v2546_v57 = vld [vmem:[#allocation2 + $0x540] ss:$16 sps:$4 sm:$0xff]   ;;  %v2549_v58 = vld [vmem:[#allocation2 + $0x548] ss:$16 sps:$4 sm:$0xff]  }
  0x85   :  { %1327 = vmatpush1.bf16.msra.mxu0 %v2462_v59  ;;  %1499 = vmatpush1.bf16.msra.mxu1 %v2465_v60  ;;  %v2554_v59 = vld [vmem:[#allocation2 + $0x564] ss:$16 sps:$4 sm:$0xff]   ;;  %v2557_v60 = vld [vmem:[#allocation2 + $0x56c] ss:$16 sps:$4 sm:$0xff]  }
  0x86   :  { %1328 = vmatprep.subr.bf16.mxu0 %v2470_v61  ;;  %1500 = vmatprep.subr.bf16.mxu1 %v2473_v62  ;;  %v2552_v61 = vld [vmem:[#allocation2 + $0x560] ss:$16 sps:$4 sm:$0xff]   ;;  %v2555_v62 = vld [vmem:[#allocation2 + $0x568] ss:$16 sps:$4 sm:$0xff]  }
  0x89   :  { %1329 = vmatpush1.bf16.msra.mxu0 %v2468_v63  ;;  %1501 = vmatpush1.bf16.msra.mxu1 %v2471_v0  ;;  %v2560_v63 = vld [vmem:[#allocation2 + $0x584] ss:$16 sps:$4 sm:$0xff]   ;;  %v2563_v0 = vld [vmem:[#allocation2 + $0x58c] ss:$16 sps:$4 sm:$0xff]  }
  0x8a   :  { %1330 = vmatprep.subr.bf16.mxu0 %v2476_v1  ;;  %1502 = vmatprep.subr.bf16.mxu1 %v2479_v2  ;;  %v2558_v1 = vld [vmem:[#allocation2 + $0x580] ss:$16 sps:$4 sm:$0xff]   ;;  %v2561_v2 = vld [vmem:[#allocation2 + $0x588] ss:$16 sps:$4 sm:$0xff]  }
  0x8d   :  { %1331 = vmatpush1.bf16.msra.mxu0 %v2474_v3  ;;  %1503 = vmatpush1.bf16.msra.mxu1 %v2477_v4  ;;  %v2566_v3 = vld [vmem:[#allocation2 + $0x5a4] ss:$16 sps:$4 sm:$0xff]   ;;  %v2569_v4 = vld [vmem:[#allocation2 + $0x5ac] ss:$16 sps:$4 sm:$0xff]  }
  0x8e   :  { %1332 = vmatprep.subr.bf16.mxu0 %v2482_v5  ;;  %1504 = vmatprep.subr.bf16.mxu1 %v2485_v6  ;;  %v2564_v5 = vld [vmem:[#allocation2 + $0x5a0] ss:$16 sps:$4 sm:$0xff]   ;;  %v2567_v6 = vld [vmem:[#allocation2 + $0x5a8] ss:$16 sps:$4 sm:$0xff]  }
  0x91   :  { %1333 = vmatpush1.bf16.msra.mxu0 %v2480_v7  ;;  %1505 = vmatpush1.bf16.msra.mxu1 %v2483_v8  ;;  %v2572_v7 = vld [vmem:[#allocation2 + $0x5c4] ss:$16 sps:$4 sm:$0xff]   ;;  %v2575_v8 = vld [vmem:[#allocation2 + $0x5cc] ss:$16 sps:$4 sm:$0xff]  }
  0x92   :  { %1345 = vmatprep.subr.bf16.mxu0 %v2488_v9  ;;  %1517 = vmatprep.subr.bf16.mxu1 %v2491_v12  ;;  %v2570_v9 = vld [vmem:[#allocation2 + $0x5c0] ss:$16 sps:$4 sm:$0xff]   ;;  %v2581_v12 = vld [vmem:[#allocation2 + $0x5ec] ss:$16 sps:$4 sm:$0xff]  }
  0x94   :  { %1335 = vmatmul.mubr.bf16.vlgmr.msra.gmra.mrb[0].mxu0 %v52_v15  ;;  %1507 = vmatmul.mubr.bf16.vlgmr.msra.gmra.mrb[0].mxu1 %v52_v15  ;;  %v40_v15 = vld [vmem:[%s2873_s0 + $0x20] sm:$0xff] }
  0x95   :  { %1346 = vmatpush1.bf16.msra.mxu0 %v2486_v13  ;;  %1518 = vmatpush1.bf16.msra.mxu1 %v2489_v14  ;;  %v2576_v13 = vld [vmem:[#allocation2 + $0x5e0] ss:$16 sps:$4 sm:$0xff]   ;;  %v2579_v14 = vld [vmem:[#allocation2 + $0x5e8] ss:$16 sps:$4 sm:$0xff]  }
  0x96   :  { %1347 = vmatprep.subr.bf16.mxu0 %v2494_v16  ;;  %1519 = vmatprep.subr.bf16.mxu1 %v2497_v17  ;;  %v47_v16 = vld [vmem:[%s2873_s0 + $0x58] sm:$0xff]  ;;  %v2584_v17 = vld [vmem:[#allocation2 + $0x604] ss:$16 sps:$4 sm:$0xff]  }
  0x97   :  { %1377 = vmatprep.mubr.bf16.mxu0 %v55_v23  ;;  %1549 = vmatprep.mubr.bf16.mxu1 %v55_v23  ;;  %v2589_v23 = vld [vmem:[%s2876_s3 + $0xc0] sm:$0xff]  }
  0x99   :  { %1348 = vmatpush1.bf16.msra.mxu0 %v2492_v19  ;;  %1520 = vmatpush1.bf16.msra.mxu1 %v2495_v20  ;;  %v54_v19 = vpack.c.bf16 %v47_v16, %v40_v15  ;;  %v2582_v20 = vld [vmem:[#allocation2 + $0x600] ss:$16 sps:$4 sm:$0xff]  }
  0x9a   :  { %1349 = vmatprep.subr.bf16.mxu0 %v2500_v22  ;;  %1521 = vmatprep.subr.bf16.mxu1 %v2503_v24  ;;  %v2588_v22 = vld [vmem:[%s2876_s3 + $0x40] sm:$0xff]   ;;  %v2671_v24 = vmov 0  }
  0x9d   :  { %1350 = vmatpush1.bf16.msra.mxu0 %v2498_v25  ;;  %1522 = vmatpush1.bf16.msra.mxu1 %v2501_v26  ;;  %v42_v25 = vld [vmem:[%s2873_s0 + $0x30] sm:$0xff]  ;;  %v49_v26 = vld [vmem:[%s2873_s0 + $0x68] sm:$0xff]  ;;  %s2672_s0 = smov [#allocation5]  }
  0x9e   :  { %1351 = vmatprep.subr.bf16.mxu0 %v2506_v27  ;;  %1523 = vmatprep.subr.bf16.mxu1 %v2509_v28  ;;  %v56_v27 = vpack.c.bf16 %v49_v26, %v42_v25  ;;  %v2590_v28 = vld [vmem:[%s2876_s3] sm:$0xff]   ;;  %s1968_s20 = sshll.u32 %s2672_s0, 4  ;;  %s1969_s20 = int_to_ptr.vmem [resolvable:$true] %s1968_s20 }
  0x9f   :  { %p2647_p9 = scmp.lt.s32.totalorder %s1969_s20, %s1969_s20 }
  0xa1   :  { %1352 = vmatpush1.bf16.msra.mxu0 %v2504_v29  ;;  %1524 = vmatpush1.bf16.msra.mxu1 %v2507_v30  ;;  %v2591_v29 = vld [vmem:[%s2876_s3 + $0x80] sm:$0xff]   ;;  %v2592_v30 = vld [vmem:[%s2876_s3 + $0x48] sm:$0xff]  }
  0xa2   :  { %1353 = vmatprep.subr.bf16.mxu0 %v2512_v31  ;;  %1525 = vmatprep.subr.bf16.mxu1 %v2515_v32  ;;  %v2593_v31 = vld [vmem:[%s2876_s3 + $0xc8] sm:$0xff]  }
  0xa3   :  { %v2594_v32 = vld [vmem:[%s2876_s3 + $0x8] sm:$0xff]  }
  0xa5   :  { %1354 = vmatpush1.bf16.msra.mxu0 %v2510_v33  ;;  %1526 = vmatpush1.bf16.msra.mxu1 %v2513_v34  ;;  %v2595_v33 = vld [vmem:[%s2876_s3 + $0x88] sm:$0xff]   ;;  %v2596_v34 = vld [vmem:[%s2876_s3 + $0x50] sm:$0xff]  }
  0xa6   :  { %1355 = vmatprep.subr.bf16.mxu0 %v2518_v35  ;;  %1527 = vmatprep.subr.bf16.mxu1 %v2521_v36  ;;  %v2597_v35 = vld [vmem:[%s2876_s3 + $0xd0] sm:$0xff]  }
  0xa7   :  { %v2598_v36 = vld [vmem:[%s2876_s3 + $0x10] sm:$0xff]  }
  0xa9   :  { %1356 = vmatpush1.bf16.msra.mxu0 %v2516_v37  ;;  %1528 = vmatpush1.bf16.msra.mxu1 %v2519_v38  ;;  %v2599_v37 = vld [vmem:[%s2876_s3 + $0x90] sm:$0xff]   ;;  %v2600_v38 = vld [vmem:[%s2876_s3 + $0x58] sm:$0xff]  }
  0xaa   :  { %1357 = vmatprep.subr.bf16.mxu0 %v2524_v39  ;;  %1529 = vmatprep.subr.bf16.mxu1 %v2527_v40  ;;  %v2601_v39 = vld [vmem:[%s2876_s3 + $0xd8] sm:$0xff]  }
  0xab   :  { %v2602_v40 = vld [vmem:[%s2876_s3 + $0x18] sm:$0xff]  }
  0xad   :  { %1358 = vmatpush1.bf16.msra.mxu0 %v2522_v41  ;;  %1530 = vmatpush1.bf16.msra.mxu1 %v2525_v42  ;;  %v2603_v41 = vld [vmem:[%s2876_s3 + $0x98] sm:$0xff]   ;;  %v2604_v42 = vld [vmem:[%s2876_s3 + $0x60] sm:$0xff]  }
  0xae   :  { %1359 = vmatprep.subr.bf16.mxu0 %v2530_v43  ;;  %1531 = vmatprep.subr.bf16.mxu1 %v2533_v44  ;;  %v2605_v43 = vld [vmem:[%s2876_s3 + $0xe0] sm:$0xff]  }
  0xaf   :  { %v2606_v44 = vld [vmem:[%s2876_s3 + $0x20] sm:$0xff]  }
  0xb1   :  { %1360 = vmatpush1.bf16.msra.mxu0 %v2528_v45  ;;  %1532 = vmatpush1.bf16.msra.mxu1 %v2531_v46  ;;  %v2607_v45 = vld [vmem:[%s2876_s3 + $0xa0] sm:$0xff]   ;;  %v2608_v46 = vld [vmem:[%s2876_s3 + $0x68] sm:$0xff]  }
  0xb2   :  { %1361 = vmatprep.subr.bf16.mxu0 %v2536_v47  ;;  %1533 = vmatprep.subr.bf16.mxu1 %v2539_v48  ;;  %v2609_v47 = vld [vmem:[%s2876_s3 + $0xe8] sm:$0xff]  }
  0xb3   :  { %v2610_v48 = vld [vmem:[%s2876_s3 + $0x28] sm:$0xff]  }
  0xb5   :  { %1362 = vmatpush1.bf16.msra.mxu0 %v2534_v49  ;;  %1534 = vmatpush1.bf16.msra.mxu1 %v2537_v50  ;;  %v2611_v49 = vld [vmem:[%s2876_s3 + $0xa8] sm:$0xff]   ;;  %v2612_v50 = vld [vmem:[%s2876_s3 + $0x70] sm:$0xff]  }
  0xb6   :  { %1363 = vmatprep.subr.bf16.mxu0 %v2542_v51  ;;  %1535 = vmatprep.subr.bf16.mxu1 %v2545_v52  ;;  %v2613_v51 = vld [vmem:[%s2876_s3 + $0xf0] sm:$0xff]  }
  0xb7   :  { %v2614_v52 = vld [vmem:[%s2876_s3 + $0x30] sm:$0xff]  }
  0xb9   :  { %1364 = vmatpush1.bf16.msra.mxu0 %v2540_v53  ;;  %1536 = vmatpush1.bf16.msra.mxu1 %v2543_v54  ;;  %v2615_v53 = vld [vmem:[%s2876_s3 + $0xb0] sm:$0xff]   ;;  %v2616_v54 = vld [vmem:[%s2876_s3 + $0x78] sm:$0xff]  }
  0xba   :  { %1365 = vmatprep.subr.bf16.mxu0 %v2548_v55  ;;  %1537 = vmatprep.subr.bf16.mxu1 %v2551_v56  ;;  %v2617_v55 = vld [vmem:[%s2876_s3 + $0xf8] sm:$0xff]  }
  0xbb   :  { %v2618_v56 = vld [vmem:[%s2876_s3 + $0x38] sm:$0xff]  }
  0xbd   :  { %1366 = vmatpush1.bf16.msra.mxu0 %v2546_v57  ;;  %1538 = vmatpush1.bf16.msra.mxu1 %v2549_v58  ;;  %v2619_v57 = vld [vmem:[%s2876_s3 + $0xb8] sm:$0xff]   ;;  %v255_v58 = vlaneseq }
  0xbe   :  { %1367 = vmatprep.subr.bf16.mxu0 %v2554_v59  ;;  %1539 = vmatprep.subr.bf16.mxu1 %v2557_v60 }
  0xbf   :  { %v256_v59 = vshrl.u32 %v255_v58, 7 }
  0xc1   :  { %1368 = vmatpush1.bf16.msra.mxu0 %v2552_v61  ;;  %1540 = vmatpush1.bf16.msra.mxu1 %v2555_v62  ;;  %v257_v60 = vsub.s32 0, %v256_v59  ;;  %v265_v61 = vsub.s32 2, %v256_v59  ;;  %v253_v62 = vld [vmem:[%s2875_s2] sm:$0xf] }
  0xc2   :  { %1369 = vmatprep.subr.bf16.mxu0 %v2560_v63  ;;  %1541 = vmatprep.subr.bf16.mxu1 %v2563_v0  ;;  %v261_v63 = vsub.s32 1, %v256_v59  ;;  %v269_v0 = vsub.s32 3, %v256_v59 }
  0xc5   :  { %1370 = vmatpush1.bf16.msra.mxu0 %v2558_v1  ;;  %1542 = vmatpush1.bf16.msra.mxu1 %v2561_v2  ;;  %v258_v1 = vrot.slane %v253_v62, %v257_v60  ;;  %v266_v2 = vrot.slane %v253_v62, %v265_v61 }
  0xc6   :  { %1371 = vmatprep.subr.bf16.mxu0 %v2566_v3  ;;  %1543 = vmatprep.subr.bf16.mxu1 %v2569_v4  ;;  %v262_v3 = vrot.slane %v253_v62, %v261_v63  ;;  %v270_v4 = vrot.slane %v253_v62, %v269_v0 }
  0xc9   :  { %1372 = vmatpush1.bf16.msra.mxu0 %v2564_v5  ;;  %1544 = vmatpush1.bf16.msra.mxu1 %v2567_v6 }
  0xca   :  { %1373 = vmatprep.subr.bf16.mxu0 %v2572_v7  ;;  %1545 = vmatprep.subr.bf16.mxu1 %v2575_v8 }
  0xcd   :  { %1374 = vmatpush1.bf16.msra.mxu0 %v2570_v9  ;;  %1546 = vmatpush1.bf16.msra.mxu1 %v2573_v10 }
  0xce   :  { %1375 = vmatprep.subr.bf16.mxu0 %v2578_v11  ;;  %1547 = vmatprep.subr.bf16.mxu1 %v2581_v12 }
  0xd1   :  { %1376 = vmatpush1.bf16.msra.mxu0 %v2576_v13  ;;  %1548 = vmatpush1.bf16.msra.mxu1 %v2579_v14 }
  0xd2   :  { %1388 = vmatprep.subr.bf16.mxu0 %v2584_v17  ;;  %1560 = vmatprep.subr.bf16.mxu1 %v2587_v18 }
  0xd4   :  { %1378 = vmatmul.mubr.bf16.vlgmr.msra.gmra.mrb[0].mxu0 %v54_v19  ;;  %1550 = vmatmul.mubr.bf16.vlgmr.msra.gmra.mrb[0].mxu1 %v54_v19 }
  0xd5   :  { %1389 = vmatpush1.bf16.msra.mxu0 %v2582_v20  ;;  %1561 = vmatpush1.bf16.msra.mxu1 %v2585_v21 }
  0xd6   :  { %1420 = vmatprep.mubr.bf16.mxu0 %v2671_v24  ;;  %1592 = vmatprep.mubr.bf16.mxu1 %v2671_v24 }
  0xd7   :  { %2211 = vmatprep.subr.bf16.mxu0 %v2588_v22  ;;  %2233 = vmatprep.subr.bf16.mxu1 %v2589_v23 }
  0xe0   :  { %2176 = vmatmul.mubr.msk.bf16.vlgmr.msra.gmra.mrb[0].mxu0 %vm1255_vm0, %v56_v27  ;;  %2177 = vmatmul.mubr.msk.bf16.vlgmr.msra.gmra.mrb[0].mxu1 %vm1255_vm0, %v56_v27 }
  0xe1   :  { %2212 = vmatpush3.bf16.msra.mxu0 %v2590_v28  ;;  %2234 = vmatpush3.bf16.msra.mxu1 %v2591_v29 }
  0xe2   :  { %2213 = vmatprep.subr.bf16.mxu0 %v2592_v30  ;;  %2235 = vmatprep.subr.bf16.mxu1 %v2593_v31 }
  0xe5   :  { %2214 = vmatpush3.bf16.msra.mxu0 %v2594_v32  ;;  %2236 = vmatpush3.bf16.msra.mxu1 %v2595_v33 }
  0xe6   :  { %2215 = vmatprep.subr.bf16.mxu0 %v2596_v34  ;;  %2237 = vmatprep.subr.bf16.mxu1 %v2597_v35  ;;  %v2178_v35 = vld [vmem:[%s2877_s4] ss:$0 sm:$0xff]  ;;  %s2642_s4 = scalar_lea.vmem %s1969_s20, 256 }
  0xe7   :  { %p2643_p8 = scmp.ne.s32.totalorder %s1969_s20, %s2642_s4  ;;  %p2648_p10 = scmp.lt.s32.totalorder %s2642_s4, %s2642_s4 }
  0xe9   :  { %2216 = vmatpush3.bf16.msra.mxu0 %v2598_v36  ;;  %2238 = vmatpush3.bf16.msra.mxu1 %v2599_v37  ;;  %p2649_p11 = por %p2648_p10, %p2647_p9 }
  0xea   :  { %2217 = vmatprep.subr.bf16.mxu0 %v2600_v38  ;;  %2239 = vmatprep.subr.bf16.mxu1 %v2601_v39 }
  0xeb   :  { %p2650_p12 = pnand %p2649_p11, %p2643_p8 }
  0xed   :  { %2218 = vmatpush3.bf16.msra.mxu0 %v2602_v40  ;;  %2240 = vmatpush3.bf16.msra.mxu1 %v2603_v41 }
  0xee   :  { %2219 = vmatprep.subr.bf16.mxu0 %v2604_v42  ;;  %2241 = vmatprep.subr.bf16.mxu1 %v2605_v43 }
  0xf1   :  { %2220 = vmatpush3.bf16.msra.mxu0 %v2606_v44  ;;  %2242 = vmatpush3.bf16.msra.mxu1 %v2607_v45 }
  0xf2   :  { %2221 = vmatprep.subr.bf16.mxu0 %v2608_v46  ;;  %2243 = vmatprep.subr.bf16.mxu1 %v2609_v47 }
  0xf5   :  { %2222 = vmatpush3.bf16.msra.mxu0 %v2610_v48  ;;  %2244 = vmatpush3.bf16.msra.mxu1 %v2611_v49 }
  0xf6   :  { %2223 = vmatprep.subr.bf16.mxu0 %v2612_v50  ;;  %2245 = vmatprep.subr.bf16.mxu1 %v2613_v51 }
  0xf9   :  { %2224 = vmatpush3.bf16.msra.mxu0 %v2614_v52  ;;  %2246 = vmatpush3.bf16.msra.mxu1 %v2615_v53 }
  0xfa   :  { %2225 = vmatprep.subr.bf16.mxu0 %v2616_v54  ;;  %2247 = vmatprep.subr.bf16.mxu1 %v2617_v55 }
  0xfd   :  { %2226 = vmatpush3.bf16.msra.mxu0 %v2618_v56  ;;  %2248 = vmatpush3.bf16.msra.mxu1 %v2619_v57 }
 0x1b3   :  { %v1422_v5 = vpop.f32.mrb[0].mxu0  ;;  %v1594_v6 = vpop.f32.mrb[0].mxu1 }
 0x1b4   :  { %v2255_v7 = vadd.f32 %v1422_v5, %v258_v1  ;;  %v2259_v8 = vadd.f32 %v1594_v6, %v266_v2  ;;  %v1424_v9 = vpop.f32.mrb[1].mxu0  ;;  %v1596_v10 = vpop.f32.mrb[1].mxu1 }
 0x1b5   :  { %v2256_v11 = vadd.f32 %v1424_v9, %v262_v3  ;;  %v2260_v12 = vadd.f32 %v1596_v10, %v270_v4  ;;  %v1426_v13 = vpop.f32.mrb[2].mxu0  ;;  %v1598_v14 = vpop.f32.mrb[2].mxu1 }
 0x1b6   :  { %v2257_v15 = vadd.f32 %v1426_v13, %v258_v1  ;;  %v2261_v16 = vadd.f32 %v1598_v14, %v266_v2  ;;  %v1428_v17 = vpop.f32.mrb[3].mxu0  ;;  %v1600_v18 = vpop.f32.mrb[3].mxu1  ;;  %v1603_v21 = vmax.f32 %v2255_v7, 0.0  ;;  %v1605_v22 = vmax.f32 %v2259_v8, 0.0 }
 0x1b7   :  { %v2258_v19 = vadd.f32 %v1428_v17, %v262_v3  ;;  %v2262_v20 = vadd.f32 %v1600_v18, %v270_v4  ;;  %v1604_v25 = vmax.f32 %v2256_v11, 0.0  ;;  %v1606_v26 = vmax.f32 %v2260_v12, 0.0 }
 0x1b8   :  { %v1607_v23 = vmax.f32 %v2257_v15, 0.0  ;;  %v1609_v24 = vmax.f32 %v2261_v16, 0.0 }
 0x1b9   :  { %v1608_v27 = vmax.f32 %v2258_v19, 0.0  ;;  %v1610_v28 = vmax.f32 %v2262_v20, 0.0 }
 0x1ba   :  { %v1611_v29 = vpack.c.bf16 %v1607_v23, %v1603_v21  ;;  %v1613_v30 = vpack.c.bf16 %v1609_v24, %v1605_v22 }
 0x1bb   :  { %v1612_v31 = vpack.c.bf16 %v1608_v27, %v1604_v25  ;;  %v1614_v32 = vpack.c.bf16 %v1610_v28, %v1606_v26 }
 0x1bd   :  { %1910 = vmatprep.mubr.bf16.mxu0 %v1612_v31  ;;  %1951 = vmatprep.mubr.bf16.mxu1 %v1614_v32 }
 0x1be   :  { %1911 = vmatmul.mubr.bf16.vlgmr.msra.gmra.mrb[4].mxu0 %v1611_v29  ;;  %1952 = vmatmul.mubr.bf16.vlgmr.msra.gmra.mrb[4].mxu1 %v1613_v30 }
 0x291   :  { %v2227_v33 = vpop.f32.mrb[4].mxu0  ;;  %v2249_v34 = vpop.f32.mrb[4].mxu1 }
 0x292   :  { %v2228_v36 = vpop.f32.mrb[5].mxu0  ;;  %v2250_v37 = vpop.f32.mrb[5].mxu1 }
 0x293   :  { %v2229_v38 = vadd.f32 %v2228_v36, %v2227_v33  ;;  %v2251_v39 = vadd.f32 %v2250_v37, %v2249_v34  ;;  %v2230_v40 = vpop.f32.mrb[6].mxu0  ;;  %v2252_v41 = vpop.f32.mrb[6].mxu1 }
 0x294   :  { %v2231_v42 = vpop.f32.mrb[7].mxu0  ;;  %v2253_v43 = vpop.f32.mrb[7].mxu1 }
 0x295   :  { %v1913_v44 = vadd.f32 %v2229_v38, %v2178_v35  ;;  %v2232_v45 = vadd.f32 %v2231_v42, %v2230_v40  ;;  %v2254_v46 = vadd.f32 %v2253_v43, %v2252_v41 }
 0x297   :  { %v1954_v47 = vadd.f32 %v2251_v39, %v1913_v44  ;;  %v1916_v48 = vadd.f32 %v2232_v45, %v2178_v35 }
 0x299   :  { %1961 = vst.msk [vmem:[#allocation5] sm:$0xff] %vm1960_vm1, %v1954_v47  ;;  %v1957_v49 = vadd.f32 %v2254_v46, %v1916_v48 }
 0x29b   :  { %1962 = vst.msk [vmem:[#allocation5 + $0x8] sm:$0xff] %vm1960_vm1, %v1957_v49 }
 0x29c   :  { %2653 = shalt.err (!%p2650_p12)
}
 0x29d   :  { %s2654_s23 = scalar_lea.hbm %s2878_s5, 256 }
 0x29e   :  { %p2655_p13 = scmp.ne.s32.totalorder %s2878_s5, %s2654_s23  ;;  %p2658_p0 = scmp.lt.u32.totalorder %s2654_s23, %s2878_s5 }
 0x2a0   :  { %p2660_p1 = pnand %p2658_p0, %p2655_p13 }
 0x2a2   :  { %2663 = shalt.err (!%p2660_p1)
}
 0x2a3   :  { %s2673_s28 = smov 128   ;;  %s2674_s29 = smov 8  }
 0x2a4   :  { %1974 = dma.vmem_to_hbm [thread:$0]  %s1969_s20, 256, %s2878_s5, [#allocation4], %s2673_s28, %s2673_s28, %s2674_s29  }
 0x2a5   :  { %2666 = dma.done.wait [#allocation4], 256  }
 0x2a6   :  { %2667 = vsyncadd [#allocation4], 4294967040 }
 0x2a7   :  { %1978 = vsyncpa [#allocation3], 1 }
 0x2a8   :  { %1979 = vsyncpa [#allocation4], 1 }

</bundles_post_ra>
